<compile_context>
chip_gen: v6e
topology: v6e:2x2x1
jax: 0.10.0
libtpu: 0.0.40
codegen_flags: <defaults>
</compile_context>

<pallas_src>
import jax
import jax.numpy as jnp
from jax.experimental import pallas as pl
from jax.experimental.pallas import tpu as pltpu

_TARGET_BLOCK_BYTES = 2 << 20     # ~2 MiB blocks: near HBM roofline; 4x (dbl-buffered
                                  # in+out) fits every generation's scoped VMEM default.
_XLA_FALLBACK_BYTES = 256 << 10   # below this a fused XLA add beats any pallas_call.


def diag_std_kernel(x_ref, eye_ref, o_ref):
    # x_ref/o_ref: (bt, nn_t) lane-dense tiles; eye_ref: (1, nn_t) broadcast row.
    # Single VPU add, full-width stores -> purely HBM-bound.
    o_ref[...] = x_ref[...] + eye_ref[...]


def _choose_tiles(B, NN, itemsize):
    """Pick (batch_tile, lane_tile) giving ~2 MiB blocks, obeying the (8,128) rule."""
    row_bytes = NN * itemsize
    if row_bytes > _TARGET_BLOCK_BYTES // 8:
        # Large N: tile the lane dim (multiple of 128) so blocks never blow VMEM.
        bt = 8 if B >= 8 else B
        nn_t = max(128, (_TARGET_BLOCK_BYTES // (bt * itemsize)) // 128 * 128)
        nn_t = min(nn_t, NN)
    else:
        nn_t = NN                                   # full-extent lane dim (always legal)
        bt_raw = _TARGET_BLOCK_BYTES // row_bytes   # >= 8 in this branch
        if bt_raw >= B:
            bt = B
        else:
            bt = (bt_raw // 8) * 8
        # Ensure >=2 grid steps for multi-MiB arrays so both v7x TCs get work.
        if bt == B and B * row_bytes > (1 << 20) and B >= 16:
            bt = max(8, ((B // 2) // 8) * 8)
    return bt, nn_t


def diag_std_forward(x, *, force_pallas=False):
    """x: [B, N, N] float -> x + eye(N), shape [B, N, N]."""
    B, N, N2 = x.shape
    assert N == N2, "DiagStd expects square trailing dims"
    NN = N * N
    itemsize = jnp.dtype(x.dtype).itemsize
    total_bytes = B * NN * itemsize

    eye_flat = jnp.eye(N, dtype=x.dtype).reshape(1, NN)

    if total_bytes < _XLA_FALLBACK_BYTES and not force_pallas:
        # Launch-overhead-bound regime: let XLA fuse the add.
        return x + eye_flat.reshape(N, N)

    xf = x.reshape(B, NN)  # lane-dense layout: last dim maps to the 128-lane axis
    bt, nn_t = _choose_tiles(B, NN, itemsize)
    grid = (pl.cdiv(B, bt), pl.cdiv(NN, nn_t))

    out_flat = pl.pallas_call(
        diag_std_kernel,
        out_shape=jax.ShapeDtypeStruct((B, NN), x.dtype),
        grid_spec=pltpu.PrefetchScalarGridSpec(
            num_scalar_prefetch=0,
            grid=grid,
            in_specs=[
                pl.BlockSpec((bt, nn_t), lambda i, j: (i, j)),   # x tile
                pl.BlockSpec((1, nn_t), lambda i, j: (0, j)),    # eye row (resident)
            ],
            out_specs=pl.BlockSpec((bt, nn_t), lambda i, j: (i, j)),
        ),
        input_output_aliases={0: 0},  # elementwise; safe to write in place when donated
        compiler_params=pltpu.CompilerParams(
            dimension_semantics=("parallel", "parallel"),
        ),
    )(xf, eye_flat)

    return out_flat.reshape(B, N, N)


if __name__ == "__main__":
    # Shipped size from the module: num_outputs=32, batch=2.
    num_outputs = 32
    batch = 2

    key = jax.random.PRNGKey(0)
    x = jax.random.normal(key, (batch, num_outputs, num_outputs), dtype=jnp.float32)
    ref = x + jnp.eye(num_outputs, dtype=jnp.float32)

    out = jax.block_until_ready(diag_std_forward(x, force_pallas=True))
    assert out.shape == ref.shape and out.dtype == ref.dtype
    assert jnp.allclose(out, ref, atol=1e-6, rtol=1e-6)

    # Larger shape: exercises multi-step batch grid, resident eye row, 2 MiB blocks.
    B2, N2 = 64, 128
    x2 = jax.random.normal(jax.random.PRNGKey(1), (B2, N2, N2), dtype=jnp.float32)
    ref2 = x2 + jnp.eye(N2, dtype=jnp.float32)
    out2 = jax.block_until_ready(diag_std_forward(x2))
    assert jnp.allclose(out2, ref2, atol=1e-6, rtol=1e-6)

    print("KERNEL_OK")
</pallas_src>

<mosaic_0001>
module attributes {stable_mosaic.version = 11 : i64} {
  func.func @diag_std_kernel(%arg0: i32, %arg1: i32, %arg2: memref<2x1024xf32, #tpu.memory_space<vmem>>, %arg3: memref<1x1024xf32, #tpu.memory_space<vmem>>, %arg4: memref<2x1024xf32, #tpu.memory_space<vmem>>) attributes {dimension_semantics = [#tpu.dimension_semantics<parallel>, #tpu.dimension_semantics<parallel>], iteration_bounds = array<i64: 1, 1>, scalar_prefetch = 0 : i64, scratch_operands = 0 : i64, tpu.core_type = #tpu.core_type<tc>, window_params = [{transform_indices = @transform_0, window_bounds = array<i64: 2, 1024>}, {transform_indices = @transform_1, window_bounds = array<i64: 1, 1024>}, {transform_indices = @transform_2, window_bounds = array<i64: 2, 1024>}]} {
    %c0 = arith.constant 0 : index
    %c0_0 = arith.constant 0 : index
    %0 = vector.load %arg2[%c0, %c0_0] : memref<2x1024xf32, #tpu.memory_space<vmem>>, vector<2x1024xf32>
    %c0_1 = arith.constant 0 : index
    %c0_2 = arith.constant 0 : index
    %1 = vector.load %arg3[%c0_1, %c0_2] : memref<1x1024xf32, #tpu.memory_space<vmem>>, vector<1x1024xf32>
    %2 = vector.broadcast %1 : vector<1x1024xf32> to vector<2x1024xf32>
    %3 = arith.addf %0, %2 : vector<2x1024xf32>
    %c0_3 = arith.constant 0 : index
    %c0_4 = arith.constant 0 : index
    %4 = vector.load %arg4[%c0_3, %c0_4] : memref<2x1024xf32, #tpu.memory_space<vmem>>, vector<2x1024xf32>
    tpu.vector_store %arg4[%c0_3, %c0_4], %3 {strides = array<i32>} : memref<2x1024xf32, #tpu.memory_space<vmem>>, vector<2x1024xf32>,
    return
  }
  func.func @transform_0(%arg0: i32, %arg1: i32) -> (i32, i32) {
    %c0_i32 = arith.constant 0 : i32
    return %arg0, %arg1 : i32, i32
  }
  func.func @transform_1(%arg0: i32, %arg1: i32) -> (i32, i32) {
    %c0_i32 = arith.constant 0 : i32
    %c0_i32_0 = arith.constant 0 : i32
    return %c0_i32, %arg1 : i32, i32
  }
  func.func @transform_2(%arg0: i32, %arg1: i32) -> (i32, i32) {
    %c0_i32 = arith.constant 0 : i32
    return %arg0, %arg1 : i32, i32
  }
}

</mosaic_0001>

<bundles_post_ra>
// kernel: tpu_custom_call.1
= control target key start
LH: loop header
LB: loop body
LE: loop exit
PB: predicated region body
PF: predicated region fallthrough
CT: control target
= control target key end

     0   :  { %7 = vsyncpa [#allocation3], 0  ;;  %s189_s0 = inlined_call_operand.hbm [shape: f32[2,1024], index: 0, kind: input, shape index: {}, may-alias: {0,2}]   ;;  %s190_s1 = inlined_call_operand.vmem [shape: f32[1,1024], index: 1, kind: input, shape index: {}]   ;;  %s191_s2 = inlined_call_operand.hbm [shape: f32[2,1024], index: 2, kind: output, shape index: {}, may-alias: {0,2}]  }
   0x1   :  { %8 = vsyncpa [#allocation4], 0  ;;  %s162_s9 = smov [#allocation2]  }
   0x2   :  { %s15_s10 = sshll.u32 %s162_s9, 4  ;;  %s16_s10 = int_to_ptr.vmem [resolvable:$true] %s15_s10 }
   0x3   :  { %s126_s11 = scalar_lea.vmem %s16_s10, 256  ;;  %p131_p1 = scmp.lt.s32.totalorder %s16_s10, %s16_s10 }
   0x4   :  { %p127_p0 = scmp.ne.s32.totalorder %s16_s10, %s126_s11  ;;  %p132_p2 = scmp.lt.s32.totalorder %s126_s11, %s126_s11 }
   0x6   :  { %p133_p3 = por %p132_p2, %p131_p1 }
   0x8   :  { %p134_p4 = pnand %p133_p3, %p127_p0 }
   0xa   :  { %137 = shalt.err (!%p134_p4)
}
   0xb   :  { %18 = dma.hbm_to_vmem [thread:$0]  %s189_s0, 256, %s16_s10, [#allocation3]  }
   0xc   :  { %158 = dma.done.wait [#allocation3], 256  }
   0xd   :  { %159 = vsyncadd [#allocation3], 4294967040  ;;  %v28_v0 = vlaneseq  ;;  %v163_v1 = vmov 1983009808   ;;  %v26_v13 = vld [vmem:[%s190_s1] sm:$0xff]  ;;  %v25_v33 = vld [vmem:[#allocation2 + $0x8] sm:$0xff] }
   0xe   :  { %v63_v2 = vunpack.c.l.s4 %v163_v1  ;;  %v24_v29 = vld [vmem:[#allocation2] sm:$0xff]  ;;  %s164_s0 = smov [#allocation5]  }
   0xf   :  { %v29_v3 = vshrl.u32 %v28_v0, 7  ;;  %s106_s1 = sshll.u32 %s164_s0, 4  ;;  %s107_s1 = int_to_ptr.vmem [resolvable:$true] %s106_s1 }
  0x10   :  { %v64_v4 = vunpack.c.0.s8 %v63_v2  ;;  %s138_s16 = scalar_lea.vmem %s107_s1, 256  ;;  %p143_p6 = scmp.lt.s32.totalorder %s107_s1, %s107_s1 }
  0x11   :  { %v30_v5 = vsub.s32 0, %v29_v3  ;;  %v34_v6 = vsub.s32 1, %v29_v3  ;;  %v38_v7 = vsub.s32 2, %v29_v3  ;;  %v42_v8 = vsub.s32 3, %v29_v3  ;;  %p139_p5 = scmp.ne.s32.totalorder %s107_s1, %s138_s16  ;;  %p144_p7 = scmp.lt.s32.totalorder %s138_s16, %s138_s16 }
  0x12   :  { %v46_v9 = vsub.s32 4, %v29_v3  ;;  %v50_v10 = vsub.s32 5, %v29_v3  ;;  %v54_v11 = vsub.s32 6, %v29_v3  ;;  %v58_v12 = vsub.s32 7, %v29_v3 }
  0x13   :  { %v67_v14 = vsub.s32 %v64_v4, %v29_v3  ;;  %v31_v15 = vrot.slane %v26_v13, %v30_v5  ;;  %v35_v16 = vrot.slane %v26_v13, %v34_v6  ;;  %v39_v17 = vrot.slane %v26_v13, %v38_v7  ;;  %p145_p8 = por %p144_p7, %p143_p6 }
  0x14   :  { %v43_v18 = vrot.slane %v26_v13, %v42_v8  ;;  %v47_v19 = vrot.slane %v26_v13, %v46_v9  ;;  %v51_v20 = vrot.slane %v26_v13, %v50_v10  ;;  %v55_v21 = vrot.slane %v26_v13, %v54_v11 }
  0x15   :  { %v59_v22 = vrot.slane %v26_v13, %v58_v12  ;;  %v60_v23 = vcombine.low %v31_v15, %v35_v16  ;;  %p146_p9 = pnand %p145_p8, %p139_p5 }
  0x16   :  { %v61_v24 = vcombine.low %v39_v17, %v43_v18  ;;  %v77_v25 = vcombine.low %v47_v19, %v51_v20 }
  0x17   :  { %v78_v26 = vcombine.low %v55_v21, %v59_v22  ;;  %v68_v27 = vrot.slane %v60_v23, %v67_v14 }
  0x18   :  { %v75_v28 = vrot.slane %v61_v24, %v67_v14  ;;  %v85_v30 = vrot.slane %v77_v25, %v67_v14 }
  0x19   :  { %v92_v31 = vrot.slane %v78_v26, %v67_v14 }
  0x1a   :  { %v76_v32 = vcombine.low %v68_v27, %v75_v28 }
  0x1b   :  { %v93_v34 = vcombine.low %v85_v30, %v92_v31 }
  0x1c   :  { %v96_v35 = vadd.f32 %v76_v32, %v24_v29 }
  0x1d   :  { %v97_v36 = vadd.f32 %v93_v34, %v25_v33 }
  0x1e   :  { %98 = vst [vmem:[#allocation5] sm:$0xff] %v96_v35 }
  0x1f   :  { %99 = vst [vmem:[#allocation5 + $0x8] sm:$0xff] %v97_v36 }
  0x20   :  { %149 = shalt.err (!%p146_p9)
}
  0x21   :  { %109 = dma.vmem_to_hbm [thread:$0]  %s107_s1, 256, %s191_s2, [#allocation4]  }
  0x22   :  { %160 = dma.done.wait [#allocation4], 256  }
  0x23   :  { %161 = vsyncadd [#allocation4], 4294967040 }
  0x24   :  { %113 = vsyncpa [#allocation3], 1 }
  0x25   :  { %114 = vsyncpa [#allocation4], 1 }

</bundles_post_ra>
